<compile_context>
chip_gen: v7x
topology: tpu7x:2x2x1
jax: 0.10.0
libtpu: 0.0.40
codegen_flags: <defaults>
</compile_context>

<pallas_src>
import jax
import jax.numpy as jnp
import numpy as np
from jax.experimental import pallas as pl
from jax.experimental.pallas import tpu as pltpu

D = 768                      # width of honour / project
N_SCALAR = 6                 # location, level, grades, apply, ranking, ranking_absolu
F_TOTAL = 2 * D + N_SCALAR   # 1542
B = 8                        # batch (one f32 sublane group; full-array blocks)


def network2_kernel(honour_ref, project_ref,
                    location_ref, level_ref, grades_ref, apply_ref,
                    ranking_ref, ranking_absolu_ref,
                    w_hp_ref, w_s_ref, out_ref):
    # Fused VPU multiply-add over the two 768-wide chunks.  w_hp is already
    # sublane-replicated to (B, 1536), so no broadcast happens in-body; the
    # static lane slices at multiples of 128 are free.
    prod = (honour_ref[...] * w_hp_ref[:, :D]
            + project_ref[...] * w_hp_ref[:, D:])               # (B, 768)  VPU
    z = jnp.sum(prod, axis=-1, keepdims=True)                    # (B, 1)    XLU

    # Six scalar features + bias: SMEM scalar weights, pure (B, 1) VPU ops.
    z = (z
         + location_ref[...] * w_s_ref[0]
         + level_ref[...] * w_s_ref[1]
         + grades_ref[...] * w_s_ref[2]
         + apply_ref[...] * w_s_ref[3]
         + ranking_ref[...] * w_s_ref[4]
         + ranking_absolu_ref[...] * w_s_ref[5]
         + w_s_ref[6])                                           # bias

    out_ref[...] = jax.nn.sigmoid(z)


def pack_params(w, b, batch):
    """One-time (init-time) repacking of fc.weight (1, 1542) / fc.bias (1,).

    * (batch, 1536) sublane-replicated, lane-dense slab for the honour/project
      halves (~48 KB at batch=8) -> no in-kernel sublane broadcast.
    * (7,) SMEM array = [w_location..w_ranking_absolu, bias].
    """
    w_hp = jnp.broadcast_to(w[:, :2 * D].astype(jnp.float32), (batch, 2 * D))
    w_s = jnp.concatenate(
        [w[0, 2 * D:], b.reshape(1)]).astype(jnp.float32)        # (7,)
    return jnp.asarray(w_hp), w_s


@jax.jit
def network2_forward(location, level, grades, apply_, ranking, ranking_absolu,
                     label, score, honour, project, w_hp, w_s):
    # label / score are unused (matches the PyTorch forward).
    del label, score
    batch = honour.shape[0]

    vmem = pl.BlockSpec(memory_space=pltpu.MemorySpace.VMEM)
    smem = pl.BlockSpec(memory_space=pltpu.MemorySpace.SMEM)

    bytes_accessed = 4 * (batch * F_TOTAL      # features
                          + batch * 2 * D      # replicated weight slab
                          + (N_SCALAR + 1)     # scalar weights + bias
                          + batch)             # output
    return pl.pallas_call(
        network2_kernel,
        out_shape=jax.ShapeDtypeStruct((batch, 1), jnp.float32),
        in_specs=[
            vmem,   # honour          (B, 768)
            vmem,   # project         (B, 768)
            vmem,   # location        (B, 1)
            vmem,   # level           (B, 1)
            vmem,   # grades          (B, 1)
            vmem,   # apply           (B, 1)
            vmem,   # ranking         (B, 1)
            vmem,   # ranking_absolu  (B, 1)
            vmem,   # w_hp            (B, 1536)
            smem,   # w_s             (7,)  scalar weights + bias
        ],
        out_specs=vmem,
        cost_estimate=pl.CostEstimate(
            flops=2 * batch * F_TOTAL,
            transcendentals=batch,
            bytes_accessed=bytes_accessed),
    )(honour, project, location, level, grades, apply_, ranking,
      ranking_absolu, w_hp, w_s)


def reference_forward(location, level, grades, apply_, ranking, ranking_absolu,
                      honour, project, w, b):
    feats = jnp.concatenate(
        [honour, project, location, level, grades, apply_, ranking,
         ranking_absolu], axis=1)                                # (B, 1542)
    z = jnp.sum(feats * w[0], axis=1, keepdims=True) + b          # full-f32 reduce
    return jax.nn.sigmoid(z)


def init_params(key):
    kw, kb = jax.random.split(key)
    # torch.nn.init.uniform_(weight, -0.2, 0.2); bias keeps default Linear init.
    w = jax.random.uniform(kw, (1, F_TOTAL), jnp.float32, -0.2, 0.2)
    bound = 1.0 / np.sqrt(F_TOTAL)
    b = jax.random.uniform(kb, (1,), jnp.float32, -bound, bound)
    return w, b


if __name__ == "__main__":
    key = jax.random.PRNGKey(0)
    kp, kd = jax.random.split(key)
    w, b = init_params(kp)
    w_hp, w_s = pack_params(w, b, B)   # hoisted out of the hot path

    dks = jax.random.split(kd, 10)
    location = jax.random.normal(dks[0], (B, 1), jnp.float32)
    level = jax.random.normal(dks[1], (B, 1), jnp.float32)
    grades = jax.random.normal(dks[2], (B, 1), jnp.float32)
    apply_ = jax.random.normal(dks[3], (B, 1), jnp.float32)
    ranking = jax.random.normal(dks[4], (B, 1), jnp.float32)
    ranking_absolu = jax.random.normal(dks[5], (B, 1), jnp.float32)
    label = jax.random.normal(dks[6], (B, 1), jnp.float32)    # unused in forward
    score = jax.random.normal(dks[7], (B, 1), jnp.float32)    # unused in forward
    honour = jax.random.normal(dks[8], (B, D), jnp.float32)
    project = jax.random.normal(dks[9], (B, D), jnp.float32)

    out = network2_forward(location, level, grades, apply_, ranking,
                           ranking_absolu, label, score, honour, project,
                           w_hp, w_s)
    out = jax.block_until_ready(out)

    ref = reference_forward(location, level, grades, apply_, ranking,
                            ranking_absolu, honour, project, w, b)
    np.testing.assert_allclose(np.asarray(out), np.asarray(ref),
                               rtol=1e-5, atol=1e-5)
    print("KERNEL_OK")
</pallas_src>

<mosaic_0001>
module attributes {stable_mosaic.version = 11 : i64} {
  func.func @network2_kernel(%arg0: memref<8x768xf32, #tpu.memory_space<vmem>>, %arg1: memref<8x768xf32, #tpu.memory_space<vmem>>, %arg2: memref<8x1xf32, #tpu.memory_space<vmem>>, %arg3: memref<8x1xf32, #tpu.memory_space<vmem>>, %arg4: memref<8x1xf32, #tpu.memory_space<vmem>>, %arg5: memref<8x1xf32, #tpu.memory_space<vmem>>, %arg6: memref<8x1xf32, #tpu.memory_space<vmem>>, %arg7: memref<8x1xf32, #tpu.memory_space<vmem>>, %arg8: memref<8x1536xf32, #tpu.memory_space<vmem>>, %arg9: memref<7xf32, #tpu.memory_space<smem>>, %arg10: memref<8x1xf32, #tpu.memory_space<vmem>>) attributes {dimension_semantics = [], scalar_prefetch = 0 : i64, scratch_operands = 0 : i64, tpu.core_type = #tpu.core_type<tc>} {
    %c0 = arith.constant 0 : index
    %c0_0 = arith.constant 0 : index
    %0 = vector.load %arg0[%c0, %c0_0] : memref<8x768xf32, #tpu.memory_space<vmem>>, vector<8x768xf32>
    %c0_1 = arith.constant 0 : index
    %c0_2 = arith.constant 0 : index
    %1 = vector.load %arg8[%c0_1, %c0_2] : memref<8x1536xf32, #tpu.memory_space<vmem>>, vector<8x768xf32>
    %2 = arith.mulf %0, %1 : vector<8x768xf32>
    %c0_3 = arith.constant 0 : index
    %c0_4 = arith.constant 0 : index
    %3 = vector.load %arg1[%c0_3, %c0_4] : memref<8x768xf32, #tpu.memory_space<vmem>>, vector<8x768xf32>
    %c0_5 = arith.constant 0 : index
    %c768 = arith.constant 768 : index
    %4 = vector.load %arg8[%c0_5, %c768] : memref<8x1536xf32, #tpu.memory_space<vmem>>, vector<8x768xf32>
    %5 = arith.mulf %3, %4 : vector<8x768xf32>
    %6 = arith.addf %2, %5 : vector<8x768xf32>
    %cst = arith.constant dense<0.000000e+00> : vector<8xf32>
    %7 = vector.multi_reduction <add>, %6, %cst [1] : vector<8x768xf32> to vector<8xf32>
    %8 = vector.shape_cast %7 : vector<8xf32> to vector<8x1xf32>
    %c0_6 = arith.constant 0 : index
    %c0_7 = arith.constant 0 : index
    %9 = vector.load %arg2[%c0_6, %c0_7] : memref<8x1xf32, #tpu.memory_space<vmem>>, vector<8x1xf32>
    %c0_8 = arith.constant 0 : index
    %10 = memref.load %arg9[%c0_8] : memref<7xf32, #tpu.memory_space<smem>>
    %11 = vector.broadcast %10 : f32 to vector<8x1xf32>
    %12 = arith.mulf %9, %11 : vector<8x1xf32>
    %13 = arith.addf %8, %12 : vector<8x1xf32>
    %c0_9 = arith.constant 0 : index
    %c0_10 = arith.constant 0 : index
    %14 = vector.load %arg3[%c0_9, %c0_10] : memref<8x1xf32, #tpu.memory_space<vmem>>, vector<8x1xf32>
    %c1 = arith.constant 1 : index
    %15 = memref.load %arg9[%c1] : memref<7xf32, #tpu.memory_space<smem>>
    %16 = vector.broadcast %15 : f32 to vector<8x1xf32>
    %17 = arith.mulf %14, %16 : vector<8x1xf32>
    %18 = arith.addf %13, %17 : vector<8x1xf32>
    %c0_11 = arith.constant 0 : index
    %c0_12 = arith.constant 0 : index
    %19 = vector.load %arg4[%c0_11, %c0_12] : memref<8x1xf32, #tpu.memory_space<vmem>>, vector<8x1xf32>
    %c2 = arith.constant 2 : index
    %20 = memref.load %arg9[%c2] : memref<7xf32, #tpu.memory_space<smem>>
    %21 = vector.broadcast %20 : f32 to vector<8x1xf32>
    %22 = arith.mulf %19, %21 : vector<8x1xf32>
    %23 = arith.addf %18, %22 : vector<8x1xf32>
    %c0_13 = arith.constant 0 : index
    %c0_14 = arith.constant 0 : index
    %24 = vector.load %arg5[%c0_13, %c0_14] : memref<8x1xf32, #tpu.memory_space<vmem>>, vector<8x1xf32>
    %c3 = arith.constant 3 : index
    %25 = memref.load %arg9[%c3] : memref<7xf32, #tpu.memory_space<smem>>
    %26 = vector.broadcast %25 : f32 to vector<8x1xf32>
    %27 = arith.mulf %24, %26 : vector<8x1xf32>
    %28 = arith.addf %23, %27 : vector<8x1xf32>
    %c0_15 = arith.constant 0 : index
    %c0_16 = arith.constant 0 : index
    %29 = vector.load %arg6[%c0_15, %c0_16] : memref<8x1xf32, #tpu.memory_space<vmem>>, vector<8x1xf32>
    %c4 = arith.constant 4 : index
    %30 = memref.load %arg9[%c4] : memref<7xf32, #tpu.memory_space<smem>>
    %31 = vector.broadcast %30 : f32 to vector<8x1xf32>
    %32 = arith.mulf %29, %31 : vector<8x1xf32>
    %33 = arith.addf %28, %32 : vector<8x1xf32>
    %c0_17 = arith.constant 0 : index
    %c0_18 = arith.constant 0 : index
    %34 = vector.load %arg7[%c0_17, %c0_18] : memref<8x1xf32, #tpu.memory_space<vmem>>, vector<8x1xf32>
    %c5 = arith.constant 5 : index
    %35 = memref.load %arg9[%c5] : memref<7xf32, #tpu.memory_space<smem>>
    %36 = vector.broadcast %35 : f32 to vector<8x1xf32>
    %37 = arith.mulf %34, %36 : vector<8x1xf32>
    %38 = arith.addf %33, %37 : vector<8x1xf32>
    %c6 = arith.constant 6 : index
    %39 = memref.load %arg9[%c6] : memref<7xf32, #tpu.memory_space<smem>>
    %40 = vector.broadcast %39 : f32 to vector<8x1xf32>
    %41 = arith.addf %38, %40 : vector<8x1xf32>
    %42 = arith.negf %41 : vector<8x1xf32>
    %43 = math.exp %42 : vector<8x1xf32>
    %cst_19 = arith.constant 1.000000e+00 : f32
    %44 = vector.broadcast %cst_19 : f32 to vector<8x1xf32>
    %45 = arith.addf %44, %43 : vector<8x1xf32>
    %46 = arith.divf %44, %45 : vector<8x1xf32>
    %c0_20 = arith.constant 0 : index
    %c0_21 = arith.constant 0 : index
    %47 = vector.load %arg10[%c0_20, %c0_21] : memref<8x1xf32, #tpu.memory_space<vmem>>, vector<8x1xf32>
    tpu.vector_store %arg10[%c0_20, %c0_21], %46 {strides = array<i32>} : memref<8x1xf32, #tpu.memory_space<vmem>>, vector<8x1xf32>,
    return
  }
}

</mosaic_0001>

<bundles_post_ra>
// kernel: network2_forward.1
= control target key start
LH: loop header
LB: loop body
LE: loop exit
PB: predicated region body
PF: predicated region fallthrough
CT: control target
= control target key end

     0   :  { %15 = vsyncpa [#allocation3], 0  ;;  %s369_s0 = inlined_call_operand.vmem [shape: f32[8,768], index: 0, kind: input, shape index: {}]   ;;  %s370_s1 = inlined_call_operand.hbm [shape: f32[8,768], index: 1, kind: input, shape index: {}]   ;;  %s371_s2 = inlined_call_operand.vmem [shape: f32[8,1], index: 2, kind: input, shape index: {}]   ;;  %s372_s3 = inlined_call_operand.vmem [shape: f32[8,1], index: 3, kind: input, shape index: {}]   ;;  %s373_s4 = inlined_call_operand.vmem [shape: f32[8,1], index: 4, kind: input, shape index: {}]   ;;  %s374_s5 = inlined_call_operand.vmem [shape: f32[8,1], index: 5, kind: input, shape index: {}]   ;;  %s375_s6 = inlined_call_operand.vmem [shape: f32[8,1], index: 6, kind: input, shape index: {}]   ;;  %s376_s7 = inlined_call_operand.vmem [shape: f32[8,1], index: 7, kind: input, shape index: {}]   ;;  %s377_s8 = inlined_call_operand.hbm [shape: f32[8,1536], index: 8, kind: input, shape index: {}]   ;;  %s378_s9 = inlined_call_operand.vmem [shape: f32[7], index: 9, kind: input, shape index: {}]   ;;  %s379_s10 = inlined_call_operand.vmem [shape: f32[8,1], index: 10, kind: output, shape index: {}]  }
   0x1   :  { %16 = vsyncpa [#allocation6], 0 }
   0x2   :  { %17 = vsyncpa [#allocation4], 0  ;;  %s245_s13 = smov [#allocation2]   ;;  %s246_s15 = smov [#allocation5]  }
   0x3   :  { %s26_s14 = sshll.u32 %s245_s13, 4  ;;  %s48_s16 = sshll.u32 %s246_s15, 4  ;;  %s27_s14 = int_to_ptr.vmem [resolvable:$true] %s26_s14  ;;  %s49_s16 = int_to_ptr.vmem [resolvable:$true] %s48_s16 }
   0x4   :  { %s183_s19 = scalar_lea.hbm %s370_s1, 768 }
   0x5   :  { %p184_p0 = scmp.ne.s32.totalorder %s370_s1, %s183_s19  ;;  %p187_p1 = scmp.lt.u32.totalorder %s183_s19, %s370_s1 }
   0x7   :  { %p189_p2 = pnand %p187_p1, %p184_p0 }
   0x9   :  { %192 = shalt.err (!%p189_p2)
}
   0xa   :  { %s193_s24 = scalar_lea.vmem %s27_s14, 768  ;;  %p198_p4 = scmp.lt.s32.totalorder %s27_s14, %s27_s14 }
   0xb   :  { %p194_p3 = scmp.ne.s32.totalorder %s27_s14, %s193_s24  ;;  %p199_p5 = scmp.lt.s32.totalorder %s193_s24, %s193_s24 }
   0xd   :  { %p200_p6 = por %p199_p5, %p198_p4 }
   0xf   :  { %p201_p7 = pnand %p200_p6, %p194_p3 }
  0x11   :  { %204 = shalt.err (!%p201_p7)
}
  0x12   :  { %29 = dma.hbm_to_vmem [thread:$0]  %s370_s1, 768, %s27_s14, [#allocation3]  }
  0x13   :  { %s205_s29 = scalar_lea.hbm %s377_s8, 1536 }
  0x14   :  { %p206_p8 = scmp.ne.s32.totalorder %s377_s8, %s205_s29  ;;  %p209_p9 = scmp.lt.u32.totalorder %s205_s29, %s377_s8 }
  0x16   :  { %p211_p10 = pnand %p209_p9, %p206_p8 }
  0x18   :  { %214 = shalt.err (!%p211_p10)
}
  0x19   :  { %s215_s15 = scalar_lea.vmem %s49_s16, 1536  ;;  %p220_p12 = scmp.lt.s32.totalorder %s49_s16, %s49_s16 }
  0x1a   :  { %p216_p11 = scmp.ne.s32.totalorder %s49_s16, %s215_s15  ;;  %p221_p13 = scmp.lt.s32.totalorder %s215_s15, %s215_s15 }
  0x1c   :  { %p222_p0 = por %p221_p13, %p220_p12 }
  0x1e   :  { %p223_p1 = pnand %p222_p0, %p216_p11 }
  0x20   :  { %226 = shalt.err (!%p223_p1)
}
  0x21   :  { %51 = dma.hbm_to_vmem [thread:$0]  %s377_s8, 1536, %s49_s16, [#allocation6]  }
  0x22   :  { %s58_s19 = sshll.u32 %s378_s9, 4  ;;  %s59_s19 = int_to_ptr.vmem [resolvable:$true] %s58_s19 }
  0x23   :  { %s227_s20 = scalar_lea.vmem %s59_s19, 16  ;;  %p232_p3 = scmp.lt.s32.totalorder %s59_s19, %s59_s19 }
  0x24   :  { %p228_p2 = scmp.ne.s32.totalorder %s59_s19, %s227_s20  ;;  %p233_p4 = scmp.lt.s32.totalorder %s227_s20, %s227_s20 }
  0x26   :  { %p234_p5 = por %p233_p4, %p232_p3 }
  0x28   :  { %p235_p6 = pnand %p234_p5, %p228_p2 }
  0x2a   :  { %238 = shalt.err (!%p235_p6)
}
  0x2b   :  { %s247_s21 = smov [#allocation7]  }
  0x2c   :  { %61 = dma.vmem_to_smem %s59_s19, 16, %s247_s21, [#allocation4]  }
  0x2d   :  { %239 = dma.done.wait [#allocation3], 768  }
  0x2e   :  { %240 = vsyncadd [#allocation3], 4294966528 }
  0x2f   :  { %241 = dma.done.wait [#allocation6], 1536  }
  0x30   :  { %242 = vsyncadd [#allocation6], 4294965760 }
  0x31   :  { %243 = dma.done.wait [#allocation4], 16  }
  0x32   :  { %244 = vsyncadd [#allocation4], 4294967280 }
  0x33   :  { %71 = sfence }
  0x34   :  { %v72_v0 = vld [vmem:[%s369_s0] sm:$0xff]  ;;  %v73_v1 = vld [vmem:[%s369_s0 + $0x8] sm:$0xff]  ;;  %v74_v2 = vld [vmem:[%s369_s0 + $0x10] sm:$0xff]  ;;  %s169_s11 = sld [smem:[#allocation7 + $0x1]]  ;;  %s170_s12 = sld [smem:[#allocation7 + $0x2]]  ;;  %vm160_vm0 = vcmask 7168  }
  0x35   :  { %v78_v3 = vld [vmem:[#allocation5] sm:$0xff]  ;;  %v79_v4 = vld [vmem:[#allocation5 + $0x8] sm:$0xff]  ;;  %v80_v5 = vld [vmem:[#allocation5 + $0x10] sm:$0xff]  ;;  %s171_s13 = sld [smem:[#allocation7 + $0x3]]  ;;  %s172_s14 = sld [smem:[#allocation7 + $0x4]] }
  0x36   :  { %v75_v6 = vld [vmem:[%s369_s0 + $0x18] sm:$0xff]  ;;  %v76_v7 = vld [vmem:[%s369_s0 + $0x20] sm:$0xff]  ;;  %v81_v8 = vld [vmem:[#allocation5 + $0x18] sm:$0xff]  ;;  %v84_v13 = vmul.f32 %v78_v3, %v72_v0  ;;  %v85_v14 = vmul.f32 %v79_v4, %v73_v1  ;;  %v86_v15 = vmul.f32 %v80_v5, %v74_v2  ;;  %s173_s19 = sld [smem:[#allocation7 + $0x5]] }
  0x37   :  { %v90_v9 = vld [vmem:[#allocation2] sm:$0xff]  ;;  %v91_v10 = vld [vmem:[#allocation2 + $0x8] sm:$0xff]  ;;  %v92_v11 = vld [vmem:[#allocation2 + $0x10] sm:$0xff]  ;;  %v87_v22 = vmul.f32 %v81_v8, %v75_v6 }
  0x38   :  { %v82_v12 = vld [vmem:[#allocation5 + $0x20] sm:$0xff]  ;;  %v93_v16 = vld [vmem:[#allocation2 + $0x18] sm:$0xff]  ;;  %v94_v17 = vld [vmem:[#allocation2 + $0x20] sm:$0xff] }
  0x39   :  { %v96_v18 = vld [vmem:[#allocation5 + $0x30] sm:$0xff]  ;;  %v97_v19 = vld [vmem:[#allocation5 + $0x38] sm:$0xff]  ;;  %v98_v20 = vld [vmem:[#allocation5 + $0x40] sm:$0xff]  ;;  %v88_v29 = vmul.f32 %v82_v12, %v76_v7 }
  0x3a   :  { %v77_v21 = vld [vmem:[%s369_s0 + $0x28] sm:$0xff]  ;;  %v99_v23 = vld [vmem:[#allocation5 + $0x48] sm:$0xff]  ;;  %v102_v25 = vmul.f32 %v96_v18, %v90_v9  ;;  %v103_v26 = vmul.f32 %v97_v19, %v91_v10  ;;  %v104_v27 = vmul.f32 %v98_v20, %v92_v11  ;;  %v95_v30 = vld [vmem:[#allocation2 + $0x28] sm:$0xff]  ;;  %s122_s0 = sld [smem:[#allocation7]]  ;;  %v128_v50 = vstv %s169_s11 }
  0x3b   :  { %v100_v24 = vld [vmem:[#allocation5 + $0x50] sm:$0xff]  ;;  %v83_v28 = vld [vmem:[#allocation5 + $0x28] sm:$0xff]  ;;  %v101_v31 = vld [vmem:[#allocation5 + $0x58] sm:$0xff]  ;;  %v105_v32 = vmul.f32 %v99_v23, %v93_v16  ;;  %v133_v53 = vstv %s170_s12  ;;  %v138_v57 = vstv %s171_s13  ;;  %v143_v61 = vstv %s172_s14 }
  0x3c   :  { %v106_v33 = vmul.f32 %v100_v24, %v94_v17  ;;  %v108_v34 = vadd.f32 %v102_v25, %v84_v13  ;;  %v109_v35 = vadd.f32 %v103_v26, %v85_v14  ;;  %v110_v36 = vadd.f32 %v104_v27, %v86_v15  ;;  %v121_v47 = vld [vmem:[%s371_s2] sm:$0xff] }
  0x3d   :  { %v89_v37 = vmul.f32 %v83_v28, %v77_v21  ;;  %v107_v38 = vmul.f32 %v101_v31, %v95_v30  ;;  %v111_v39 = vadd.f32 %v105_v32, %v87_v22  ;;  %v126_v49 = vld [vmem:[%s372_s3] sm:$0xff]  ;;  %s174_s3 = sld [smem:[#allocation7 + $0x6]]  ;;  %v148_v1 = vstv %s173_s19 }
  0x3e   :  { %v114_v40 = vadd.f32 %v109_v35, %v108_v34  ;;  %v112_v41 = vadd.f32 %v106_v33, %v88_v29  ;;  %v131_v52 = vld [vmem:[%s373_s4] sm:$0xff]  ;;  %v129_v54 = vmul.f32 %v128_v50, %v126_v49 }
  0x3f   :  { %v113_v43 = vadd.f32 %v107_v38, %v89_v37  ;;  %v136_v56 = vld [vmem:[%s374_s5] sm:$0xff]  ;;  %v134_v59 = vmul.f32 %v133_v53, %v131_v52 }
  0x40   :  { %v115_v42 = vadd.f32 %v114_v40, %v110_v36  ;;  %v123_v48 = vstv %s122_s0  ;;  %v141_v60 = vld [vmem:[%s375_s6] sm:$0xff]  ;;  %v139_v63 = vmul.f32 %v138_v57, %v136_v56 }
  0x41   :  { %v124_v51 = vmul.f32 %v123_v48, %v121_v47  ;;  %v146_v0 = vld [vmem:[%s376_s7] sm:$0xff]  ;;  %v144_v3 = vmul.f32 %v143_v61, %v141_v60 }
  0x42   :  { %v116_v44 = vadd.f32 %v115_v42, %v111_v39  ;;  %v149_v5 = vmul.f32 %v148_v1, %v146_v0 }
  0x43   :  { %v152_v7 = vstv %s174_s3 }
  0x44   :  { %v117_v45 = vadd.f32 %v116_v44, %v112_v41 }
  0x46   :  { %v118_v46 = vadd.f32 %v117_v45, %v113_v43 }
  0x48   :  { %119 = vadd.xlane.f32.xlu0 %v118_v46 }
  0xd5   :  { %v120_v55 = vpop.xlane.xlu0 %119 }
  0xd6   :  { %v125_v58 = vadd.f32 %v124_v51, %v120_v55 }
  0xd8   :  { %v130_v62 = vadd.f32 %v129_v54, %v125_v58 }
  0xda   :  { %v135_v2 = vadd.f32 %v134_v59, %v130_v62 }
  0xdc   :  { %v140_v4 = vadd.f32 %v139_v63, %v135_v2 }
  0xde   :  { %v145_v6 = vadd.f32 %v144_v3, %v140_v4 }
  0xe0   :  { %v150_v8 = vadd.f32 %v149_v5, %v145_v6 }
  0xe2   :  { %v153_v9 = vadd.f32 %v152_v7, %v150_v8 }
  0xe4   :  { %v175_v10 = vmul.f32 -1.442695, %v153_v9 }
  0xe6   :  { %179 = vpow2.f32 %v175_v10 }
  0xf0   :  { %v180_v11 = vpop.eup %179 }
  0xf1   :  { %v157_v12 = vadd.f32 1.0, %v180_v11 }
  0xf3   :  { %181 = vrcp.f32 %v157_v12 }
  0xfd   :  { %v182_v13 = vpop.eup %181 }
  0xfe   :  { %161 = vst.msk [vmem:[%s379_s10] sm:$0xff] %vm160_vm0, %v182_v13 }
  0xff   :  { %166 = vsyncpa [#allocation3], 1 }
 0x100   :  { %167 = vsyncpa [#allocation6], 1 }
 0x101   :  { %168 = vsyncpa [#allocation4], 1 }

</bundles_post_ra>
